<compile_context>
chip_gen: v6e
topology: v6e:2x2x1
jax: 0.10.0
libtpu: 0.0.40
codegen_flags: <defaults>
</compile_context>

<pallas_src>
import jax
import jax.numpy as jnp
from jax.experimental import pallas as pl
from jax.experimental.pallas import tpu as pltpu


_MAX_TILE = 32768  # lanes per class-row per grid step (C=4 f32 -> 512 KiB / input block)


def _round_up(x, m):
    return (x + m - 1) // m * m


def _dice_bce_partial_kernel(pred_ref, tgt_ref, inter_ref, sump_ref, sumt_ref, bce_ref):
    # pred_ref / tgt_ref: (1, C, TILE) blocks in input dtype.
    # outputs: (1, 1, C, 1) f32 per-block partial sums.
    p = pred_ref[0].astype(jnp.float32)   # (C, TILE)
    t = tgt_ref[0].astype(jnp.float32)    # (C, TILE)

    # Binary cross entropy, PyTorch clamps the log terms at -100 (also makes
    # zero-padded tail elements contribute exactly 0).
    log_p = jnp.maximum(jnp.log(p), -100.0)
    log_1mp = jnp.maximum(jnp.log(1.0 - p), -100.0)
    bce = -(t * log_p + (1.0 - t) * log_1mp)

    # Batched per-class lane reductions (one XLU chain per quantity).
    inter_ref[0, 0] = jnp.sum(p * t, axis=-1, keepdims=True)   # (C, 1)
    sump_ref[0, 0] = jnp.sum(p, axis=-1, keepdims=True)        # (C, 1)
    sumt_ref[0, 0] = jnp.sum(t, axis=-1, keepdims=True)        # (C, 1)
    bce_ref[0, 0] = jnp.sum(bce, axis=-1, keepdims=True)       # (C, 1)


def dice_bce_loss(pred, target):
    """DiceBCELoss forward. pred/target: (N, C, H, W); pred values in (0, 1)."""
    N, C, H, W = pred.shape
    hw = H * W

    # Free reshape (no data movement): NCHW -> (N, C, H*W). No astype here —
    # the kernel upcasts after DMA, so bf16 inputs stream at half the bytes.
    p3 = pred.reshape(N, C, hw)
    t3 = target.reshape(N, C, hw)

    tile = min(_MAX_TILE, _round_up(hw, 128))
    hw_pad = _round_up(hw, tile)
    if hw_pad != hw:
        # Zero padding contributes exactly 0 to every partial sum.
        pad = ((0, 0), (0, 0), (0, hw_pad - hw))
        p3 = jnp.pad(p3, pad)
        t3 = jnp.pad(t3, pad)
    num_tiles = hw_pad // tile

    partial_shape = jax.ShapeDtypeStruct((N, num_tiles, C, 1), jnp.float32)
    inter_p, sump_p, sumt_p, bce_p = pl.pallas_call(
        _dice_bce_partial_kernel,
        out_shape=(partial_shape, partial_shape, partial_shape, partial_shape),
        grid=(N, num_tiles),
        in_specs=[
            pl.BlockSpec((1, C, tile), lambda n, tb: (n, 0, tb)),
            pl.BlockSpec((1, C, tile), lambda n, tb: (n, 0, tb)),
        ],
        out_specs=(
            pl.BlockSpec((1, 1, C, 1), lambda n, tb: (n, tb, 0, 0)),
            pl.BlockSpec((1, 1, C, 1), lambda n, tb: (n, tb, 0, 0)),
            pl.BlockSpec((1, 1, C, 1), lambda n, tb: (n, tb, 0, 0)),
            pl.BlockSpec((1, 1, C, 1), lambda n, tb: (n, tb, 0, 0)),
        ),
        compiler_params=pltpu.CompilerParams(
            dimension_semantics=("parallel", "parallel"),
        ),
    )(p3, t3)

    # Tiny finalize on the partials in plain JAX (negligible vs HBM streaming).
    inter = jnp.sum(inter_p, axis=(0, 1, 3))   # (C,)
    sum_p = jnp.sum(sump_p, axis=(0, 1, 3))    # (C,)
    sum_t = jnp.sum(sumt_p, axis=(0, 1, 3))    # (C,)
    bce_total = jnp.sum(bce_p)

    smooth = 1.0
    # Dice over classes 1..C-1 (background class 0 excluded), as in the module.
    dice = jnp.sum((2.0 * inter[1:] + smooth) / (sum_p[1:] + sum_t[1:] + smooth))
    dice_loss = jnp.clip(1.0 - dice, 0.0, 1.0)
    bce_mean = bce_total / float(N * C * H * W)
    return 0.5 * dice_loss + 0.5 * bce_mean


def _reference(pred, target):
    """Pure-JAX reference mirroring the PyTorch module semantics."""
    smooth = 1.0
    C = pred.shape[1]
    dice = 0.0
    for c in range(1, C):
        inter = jnp.sum(pred[:, c] * target[:, c])
        union = jnp.sum(pred[:, c]) + jnp.sum(target[:, c])
        dice = dice + (2.0 * inter + smooth) / (union + smooth)
    dice_loss = jnp.clip(1.0 - dice, 0.0, 1.0)
    log_p = jnp.maximum(jnp.log(pred), -100.0)
    log_1mp = jnp.maximum(jnp.log(1.0 - pred), -100.0)
    bce = jnp.mean(-(target * log_p + (1.0 - target) * log_1mp))
    return 0.5 * dice_loss + 0.5 * bce


if __name__ == "__main__":
    key = jax.random.PRNGKey(0)
    k1, k2 = jax.random.split(key)

    N, C, H, W = 2, 4, 16, 16
    # Predictions already in (0, 1) (as expected by F.binary_cross_entropy).
    pred = jax.nn.sigmoid(jax.random.normal(k1, (N, C, H, W), dtype=jnp.float32))
    target = jax.random.bernoulli(k2, p=0.3, shape=(N, C, H, W)).astype(jnp.float32)

    loss = dice_bce_loss(pred, target)
    jax.block_until_ready(loss)

    ref = _reference(pred, target)
    assert jnp.allclose(loss, ref, rtol=1e-5, atol=1e-5), (loss, ref)

    print("KERNEL_OK")
</pallas_src>

<mosaic_0001>
module attributes {stable_mosaic.version = 11 : i64} {
  func.func @_dice_bce_partial_kernel(%arg0: i32, %arg1: i32, %arg2: memref<1x4x256xf32, #tpu.memory_space<vmem>>, %arg3: memref<1x4x256xf32, #tpu.memory_space<vmem>>, %arg4: memref<1x1x4x1xf32, #tpu.memory_space<vmem>>, %arg5: memref<1x1x4x1xf32, #tpu.memory_space<vmem>>, %arg6: memref<1x1x4x1xf32, #tpu.memory_space<vmem>>, %arg7: memref<1x1x4x1xf32, #tpu.memory_space<vmem>>) attributes {dimension_semantics = [#tpu.dimension_semantics<parallel>, #tpu.dimension_semantics<parallel>], iteration_bounds = array<i64: 2, 1>, scalar_prefetch = 0 : i64, scratch_operands = 0 : i64, tpu.core_type = #tpu.core_type<tc>, window_params = [{transform_indices = @transform_0, window_bounds = array<i64: 1, 4, 256>}, {transform_indices = @transform_1, window_bounds = array<i64: 1, 4, 256>}, {transform_indices = @transform_2, window_bounds = array<i64: 1, 1, 4, 1>}, {transform_indices = @transform_3, window_bounds = array<i64: 1, 1, 4, 1>}, {transform_indices = @transform_4, window_bounds = array<i64: 1, 1, 4, 1>}, {transform_indices = @transform_5, window_bounds = array<i64: 1, 1, 4, 1>}]} {
    %c0 = arith.constant 0 : index
    %c0_0 = arith.constant 0 : index
    %c0_1 = arith.constant 0 : index
    %0 = vector.load %arg2[%c0, %c0_0, %c0_1] : memref<1x4x256xf32, #tpu.memory_space<vmem>>, vector<1x4x256xf32>
    %1 = vector.shape_cast %0 : vector<1x4x256xf32> to vector<4x256xf32>
    %c0_2 = arith.constant 0 : index
    %c0_3 = arith.constant 0 : index
    %c0_4 = arith.constant 0 : index
    %2 = vector.load %arg3[%c0_2, %c0_3, %c0_4] : memref<1x4x256xf32, #tpu.memory_space<vmem>>, vector<1x4x256xf32>
    %3 = vector.shape_cast %2 : vector<1x4x256xf32> to vector<4x256xf32>
    %4 = math.log %1 : vector<4x256xf32>
    %cst = arith.constant -1.000000e+02 : f32
    %5 = vector.broadcast %cst : f32 to vector<4x256xf32>
    %6 = arith.maximumf %4, %5 : vector<4x256xf32>
    %cst_5 = arith.constant 1.000000e+00 : f32
    %7 = vector.broadcast %cst_5 : f32 to vector<4x256xf32>
    %8 = arith.subf %7, %1 : vector<4x256xf32>
    %9 = math.log %8 : vector<4x256xf32>
    %cst_6 = arith.constant -1.000000e+02 : f32
    %10 = vector.broadcast %cst_6 : f32 to vector<4x256xf32>
    %11 = arith.maximumf %9, %10 : vector<4x256xf32>
    %12 = arith.mulf %3, %6 : vector<4x256xf32>
    %cst_7 = arith.constant 1.000000e+00 : f32
    %13 = vector.broadcast %cst_7 : f32 to vector<4x256xf32>
    %14 = arith.subf %13, %3 : vector<4x256xf32>
    %15 = arith.mulf %14, %11 : vector<4x256xf32>
    %16 = arith.addf %12, %15 : vector<4x256xf32>
    %cst_8 = arith.constant 0.000000e+00 : f32
    %17 = vector.broadcast %cst_8 : f32 to vector<4x256xf32>
    %18 = arith.subf %17, %16 : vector<4x256xf32>
    %19 = arith.mulf %1, %3 : vector<4x256xf32>
    %cst_9 = arith.constant dense<0.000000e+00> : vector<4xf32>
    %20 = vector.multi_reduction <add>, %19, %cst_9 [1] : vector<4x256xf32> to vector<4xf32>
    %21 = vector.shape_cast %20 : vector<4xf32> to vector<4x1xf32>
    %c0_10 = arith.constant 0 : index
    %c0_11 = arith.constant 0 : index
    %c0_12 = arith.constant 0 : index
    %c0_13 = arith.constant 0 : index
    %22 = vector.load %arg4[%c0_10, %c0_11, %c0_12, %c0_13] : memref<1x1x4x1xf32, #tpu.memory_space<vmem>>, vector<1x1x4x1xf32>
    %23 = vector.shape_cast %22 : vector<1x1x4x1xf32> to vector<4x1xf32>
    %24 = vector.shape_cast %21 : vector<4x1xf32> to vector<1x1x4x1xf32>
    tpu.vector_store %arg4[%c0_10, %c0_11, %c0_12, %c0_13], %24 {strides = array<i32>} : memref<1x1x4x1xf32, #tpu.memory_space<vmem>>, vector<1x1x4x1xf32>,
    %cst_14 = arith.constant dense<0.000000e+00> : vector<4xf32>
    %25 = vector.multi_reduction <add>, %1, %cst_14 [1] : vector<4x256xf32> to vector<4xf32>
    %26 = vector.shape_cast %25 : vector<4xf32> to vector<4x1xf32>
    %c0_15 = arith.constant 0 : index
    %c0_16 = arith.constant 0 : index
    %c0_17 = arith.constant 0 : index
    %c0_18 = arith.constant 0 : index
    %27 = vector.load %arg5[%c0_15, %c0_16, %c0_17, %c0_18] : memref<1x1x4x1xf32, #tpu.memory_space<vmem>>, vector<1x1x4x1xf32>
    %28 = vector.shape_cast %27 : vector<1x1x4x1xf32> to vector<4x1xf32>
    %29 = vector.shape_cast %26 : vector<4x1xf32> to vector<1x1x4x1xf32>
    tpu.vector_store %arg5[%c0_15, %c0_16, %c0_17, %c0_18], %29 {strides = array<i32>} : memref<1x1x4x1xf32, #tpu.memory_space<vmem>>, vector<1x1x4x1xf32>,
    %cst_19 = arith.constant dense<0.000000e+00> : vector<4xf32>
    %30 = vector.multi_reduction <add>, %3, %cst_19 [1] : vector<4x256xf32> to vector<4xf32>
    %31 = vector.shape_cast %30 : vector<4xf32> to vector<4x1xf32>
    %c0_20 = arith.constant 0 : index
    %c0_21 = arith.constant 0 : index
    %c0_22 = arith.constant 0 : index
    %c0_23 = arith.constant 0 : index
    %32 = vector.load %arg6[%c0_20, %c0_21, %c0_22, %c0_23] : memref<1x1x4x1xf32, #tpu.memory_space<vmem>>, vector<1x1x4x1xf32>
    %33 = vector.shape_cast %32 : vector<1x1x4x1xf32> to vector<4x1xf32>
    %34 = vector.shape_cast %31 : vector<4x1xf32> to vector<1x1x4x1xf32>
    tpu.vector_store %arg6[%c0_20, %c0_21, %c0_22, %c0_23], %34 {strides = array<i32>} : memref<1x1x4x1xf32, #tpu.memory_space<vmem>>, vector<1x1x4x1xf32>,
    %cst_24 = arith.constant dense<0.000000e+00> : vector<4xf32>
    %35 = vector.multi_reduction <add>, %18, %cst_24 [1] : vector<4x256xf32> to vector<4xf32>
    %36 = vector.shape_cast %35 : vector<4xf32> to vector<4x1xf32>
    %c0_25 = arith.constant 0 : index
    %c0_26 = arith.constant 0 : index
    %c0_27 = arith.constant 0 : index
    %c0_28 = arith.constant 0 : index
    %37 = vector.load %arg7[%c0_25, %c0_26, %c0_27, %c0_28] : memref<1x1x4x1xf32, #tpu.memory_space<vmem>>, vector<1x1x4x1xf32>
    %38 = vector.shape_cast %37 : vector<1x1x4x1xf32> to vector<4x1xf32>
    %39 = vector.shape_cast %36 : vector<4x1xf32> to vector<1x1x4x1xf32>
    tpu.vector_store %arg7[%c0_25, %c0_26, %c0_27, %c0_28], %39 {strides = array<i32>} : memref<1x1x4x1xf32, #tpu.memory_space<vmem>>, vector<1x1x4x1xf32>,
    return
  }
  func.func @transform_0(%arg0: i32, %arg1: i32) -> (i32, i32, i32) {
    %c0_i32 = arith.constant 0 : i32
    %c0_i32_0 = arith.constant 0 : i32
    return %arg0, %c0_i32, %arg1 : i32, i32, i32
  }
  func.func @transform_1(%arg0: i32, %arg1: i32) -> (i32, i32, i32) {
    %c0_i32 = arith.constant 0 : i32
    %c0_i32_0 = arith.constant 0 : i32
    return %arg0, %c0_i32, %arg1 : i32, i32, i32
  }
  func.func @transform_2(%arg0: i32, %arg1: i32) -> (i32, i32, i32, i32) {
    %c0_i32 = arith.constant 0 : i32
    %c0_i32_0 = arith.constant 0 : i32
    %c0_i32_1 = arith.constant 0 : i32
    return %arg0, %arg1, %c0_i32, %c0_i32_0 : i32, i32, i32, i32
  }
  func.func @transform_3(%arg0: i32, %arg1: i32) -> (i32, i32, i32, i32) {
    %c0_i32 = arith.constant 0 : i32
    %c0_i32_0 = arith.constant 0 : i32
    %c0_i32_1 = arith.constant 0 : i32
    return %arg0, %arg1, %c0_i32, %c0_i32_0 : i32, i32, i32, i32
  }
  func.func @transform_4(%arg0: i32, %arg1: i32) -> (i32, i32, i32, i32) {
    %c0_i32 = arith.constant 0 : i32
    %c0_i32_0 = arith.constant 0 : i32
    %c0_i32_1 = arith.constant 0 : i32
    return %arg0, %arg1, %c0_i32, %c0_i32_0 : i32, i32, i32, i32
  }
  func.func @transform_5(%arg0: i32, %arg1: i32) -> (i32, i32, i32, i32) {
    %c0_i32 = arith.constant 0 : i32
    %c0_i32_0 = arith.constant 0 : i32
    %c0_i32_1 = arith.constant 0 : i32
    return %arg0, %arg1, %c0_i32, %c0_i32_0 : i32, i32, i32, i32
  }
}

</mosaic_0001>

<bundles_post_ra>
// kernel: tpu_custom_call.1
= control target key start
LH: loop header
LB: loop body
LE: loop exit
PB: predicated region body
PF: predicated region fallthrough
CT: control target
= control target key end

     0   :  { %11 = vsyncpa [#allocation3], 0  ;;  %s1026_s0 = inlined_call_operand.hbm [shape: f32[2,4,256], index: 0, kind: input, shape index: {}]   ;;  %s1027_s1 = inlined_call_operand.hbm [shape: f32[2,4,256], index: 1, kind: input, shape index: {}]   ;;  %s1028_s2 = inlined_call_operand.vmem [shape: f32[2,1,4,1], index: 2, kind: output, shape index: {0}]   ;;  %s1029_s3 = inlined_call_operand.vmem [shape: f32[2,1,4,1], index: 3, kind: output, shape index: {1}]   ;;  %s1030_s4 = inlined_call_operand.vmem [shape: f32[2,1,4,1], index: 4, kind: output, shape index: {2}]   ;;  %s1031_s5 = inlined_call_operand.vmem [shape: f32[2,1,4,1], index: 5, kind: output, shape index: {3}]  }
   0x1   :  { %13 = vsyncpa [#allocation3 + $0x1], 0 }
   0x2   :  { %14 = vsyncpa [#allocation5], 0 }
   0x3   :  { %16 = vsyncpa [#allocation5 + $0x1], 0  ;;  %s883_s18 = smov 0   ;;  %s885_s19 = smov 0  }
   0x4   :  { %s887_s20 = smov 0   ;;  %s889_s21 = smov 0  }
   0x5   :  { %s891_s22 = smov 0   ;;  %s893_s23 = smov 0  }
   0x6 LB: > { %s652_s24 = sadd.s32 4294967295, %s849_s23   ;;  %s34_s25 = sadd.s32 1, %s845_s22  ;;  %s849_s23 = sphi %s893_s23, %s22_s23   ;;  %s845_s22 = sphi %s891_s22, %s1040_s22   ;;  %s841_s21 = sphi %s889_s21, %s1039_s21   ;;  %s837_s20 = sphi %s887_s20, %s1038_s20   ;;  %s833_s19 = sphi %s885_s19, %s1037_s19   ;;  %s829_s18 = sphi %s883_s18, %s1036_s18  }
   0x7   : > { %p36_p0 = scmp.ge.s32.totalorder %s34_s25, 2  ;;  %s43_s26 = sadd.s32 1, %s837_s20 }
   0x8   : > { %p50_p1 = scmp.ne.s32.totalorder %s837_s20, %s833_s19  ;;  %p51_p2 = scmp.eq.s32.totalorder %s849_s23, 0 }
   0x9   : > { %s1042_s25 = smov (%p36_p0, %s34_s25), 0  ;;  %p56_p4 = scmp.ne.s32.totalorder %s833_s19, %s829_s18 }
   0xa   : > { %p919_p3 = por %p51_p2, %p50_p1  ;;  %s38_s28 = ssub.s32 %s845_s22, %s1042_s25 }
   0xb   : > { %p57_p5 = scmp.eq.s32.totalorder %s652_s24, 0  ;;  %p41_p6 = scmp.eq.s32.totalorder %s38_s28, 0 }
   0xc   : > { %p684_p8 = scmp.lt.s32.totalorder %s849_s23, 2  ;;  %s935_s6 = sand.u32 1, %s837_s20  }
   0xd   : > { %p926_p7 = por %p57_p5, %p56_p4  ;;  %s671_s7 = sshll.u32 %s845_s22, 7 }
   0xe   : > { %s932_s30 = scalar_select %p41_p6, %s837_s20, %s43_s26  }
   0xf   : > { %s656_s8 = sshll.u32 %s935_s6, 3  ;;  %s232_s11 = scalar_lea.hbm %s1026_s0, %s671_s7 }
  0x10   : > { %s224_s12 = scalar_lea.vmem [#allocation2], %s656_s8  ;;  %p944_p9 = pnand %p684_p8, %p919_p3 }
  0x11   : > { %s234_s13 = sshll.u32 %s224_s12, 4  ;;  %p662_p10 = scmp.ge.s32.totalorder %s849_s23, 1  ;;  %s235_s13 = int_to_ptr.vmem [resolvable:$true] %s234_s13 }
  0x12   : > { %p260_p11 = scmp.lt.s32.totalorder %s849_s23, 3  ;;  %s221_s15 = scalar_lea.sflag [#allocation3], %s935_s6 }
  0x13   : > { %p741_p12 = pneg %p944_p9  ;;  %s752_s16 = scalar_lea.vmem %s235_s13, 128 }
  0x14   : > { %p753_p13 = scmp.ne.s32.totalorder %s235_s13, %s752_s16  ;;  %s851_s17 = smov [#allocation2]  }
  0x15   : > { %s757_s18 = sshll.u32 %s851_s17, 4  ;;  %s758_s18 = int_to_ptr.vmem [resolvable:$false] %s757_s18 }
  0x16   : > { %p755_p0 = pnand %p753_p13, %p741_p12  ;;  %s759_s24 = scalar_lea.vmem %s758_s18, 256 }
  0x17   : > { %p760_p2 = scmp.lt.s32.totalorder %s235_s13, %s758_s18  ;;  %p761_p3 = scmp.lt.s32.totalorder %s759_s24, %s752_s16 }
  0x18   : > { %p756_p1 = pneg %p755_p0 }
  0x19   : > { %p762_p4 = por %p761_p3, %p760_p2 }
  0x1b   : > { %p763_p5 = pnand %p762_p4, %p756_p1 }
  0x1d   : > { %766 = shalt.err (!%p763_p5)
}
  0x1e   : > { %680 = dma.hbm_to_vmem [thread:$0]  (!%p944_p9), %s232_s11, 128, %s235_s13, %s221_s15  }
  0x1f   : > { %p962_p6 = pnand %p662_p10, %p260_p11  ;;  %s253_s9 = scalar_lea.hbm %s1027_s1, %s671_s7 }
  0x20   : > { %s245_s10 = scalar_lea.vmem [#allocation4], %s656_s8  ;;  %s242_s16 = scalar_lea.sflag [#allocation5], %s935_s6 }
  0x21   : > { %s255_s12 = sshll.u32 %s245_s10, 4  ;;  %s852_s11 = smov [#allocation4]   ;;  %s256_s12 = int_to_ptr.vmem [resolvable:$true] %s255_s12 }
  0x22   : > { %s780_s17 = scalar_lea.vmem %s256_s12, 128  ;;  %s785_s13 = sshll.u32 %s852_s11, 4  ;;  %s786_s13 = int_to_ptr.vmem [resolvable:$false] %s785_s13 }
  0x23   : > { %p781_p8 = scmp.ne.s32.totalorder %s256_s12, %s780_s17  ;;  %s787_s15 = scalar_lea.vmem %s786_s13, 256 }
  0x24   : > { %p788_p10 = scmp.lt.s32.totalorder %s256_s12, %s786_s13  ;;  %p789_p11 = scmp.lt.s32.totalorder %s787_s15, %s780_s17 }
  0x25   : > { %p783_p13 = pnand %p781_p8, %p741_p12 }
  0x26   : > { %p790_p1 = por %p789_p11, %p788_p10 }
  0x27   : > { %p784_p0 = pneg %p783_p13 }
  0x29   : > { %p791_p2 = pnand %p790_p1, %p784_p0 }
  0x2b   : > { %794 = shalt.err (!%p791_p2)
}
  0x2c   : > { %683 = dma.hbm_to_vmem [thread:$0]  (!%p944_p9), %s253_s9, 128, %s256_s12, %s242_s16  }
  0x2d   : > { %264 = sbr.rel (%p962_p6) target bundleno = 225 (0xe1), region = 28  ;;  %s266_s6 = sand.u32 (!%p962_p6), 1, %s833_s19  }
  0x2e   : > { %s663_s7 = sshll.u32 (!%p962_p6), %s266_s6, 3  ;;  %s267_s8 = scalar_lea.sflag (!%p962_p6), [#allocation3], %s266_s6 }
  0x2f   : > { %s270_s18 = scalar_lea.vmem (!%p962_p6), [#allocation2], %s663_s7 }
  0x32   : > { %820 = dma.done.wait (%p926_p7), %s267_s8, 128  }
  0x33   : > { %822 = vsyncadd (%p926_p7), %s267_s8, 4294967168  ;;  %s276_s24 = scalar_lea.sflag [#allocation5], %s266_s6  ;;  %s279_s27 = scalar_lea.vmem [#allocation4], %s663_s7 }
  0x34   : > { %824 = dma.done.wait (%p926_p7), %s276_s24, 128  }
  0x35   : > { %826 = vsyncadd (%p926_p7), %s276_s24, 4294967168  ;;  %vm382_vm0 = vcmask 1043456   ;;  %v365_v0 = vld [vmem:[%s279_s27] sm:$0xff]  ;;  %v364_v1 = vld [vmem:[%s270_s18] sm:$0xff]  ;;  %p336_p7 = scmp.lt.s32.totalorder %s841_s21, 1  ;;  %vm388_vm1 = vcmask 3072  }
  0x36   : > { %v400_v2 = vcombine.high %v365_v0, %v365_v0  ;;  %v402_v3 = vsel %vm382_vm0, %v365_v0, 0.0  ;;  %v378_v4 = vmul.f32 %v365_v0, %v364_v1  ;;  %v391_v5 = vcombine.high %v364_v1, %v364_v1 }
  0x37   : > { %735 = vlog2.f32 %v364_v1  ;;  %v369_v6 = vsub.f32 1.0, %v364_v1  ;;  %v393_v12 = vsel %vm382_vm0, %v364_v1, 0.0  ;;  %v374_v21 = vsub.f32 1.0, %v365_v0  ;;  %s1044_s21 = smov (!%p336_p7, %s841_s21), 1 }
  0x38   : > { %v403_v7 = vsel %vm382_vm0, %v400_v2, 0.0  ;;  %v380_v8 = vcombine.high %v378_v4, %v378_v4  ;;  %v383_v9 = vsel %vm382_vm0, %v378_v4, 0.0  ;;  %v394_v13 = vsel %vm382_vm0, %v391_v5, 0.0  ;;  %s665_s29 = sshll.u32 %s1044_s21, 2 }
  0x39   : > { %v404_v10 = vadd.f32 %v403_v7, %v402_v3  ;;  %737 = vlog2.f32 %v369_v6  ;;  %v395_v15 = vadd.f32 %v394_v13, %v393_v12  ;;  %s356_s28 = scalar_lea.vmem %s1030_s4, %s665_s29  ;;  %s342_s12 = scalar_lea.vmem %s1028_s2, %s665_s29 }
  0x3a   : > { %v384_v11 = vsel %vm382_vm0, %v380_v8, 0.0  ;;  %s349_s11 = scalar_lea.vmem %s1029_s3, %s665_s29  ;;  %s363_s15 = scalar_lea.vmem %s1031_s5, %s665_s29 }
  0x3b   : > { %405 = vadd.xlane.f32.xlu1 %v404_v10  ;;  %v385_v14 = vadd.f32 %v384_v11, %v383_v9 }
  0x3d   : > { %386 = vadd.xlane.f32.xlu0 %v385_v14 }
  0x41   : > { %396 = vadd.xlane.f32.xlu0 %v395_v15 }
  0x44   : > { %v736_v16 = vpop.eup %735 }
  0x45   : > { %v367_v17 = vmul.f32 0.6931472, %v736_v16 }
  0x46   : > { %v738_v18 = vpop.eup %737 }
  0x47   : > { %v368_v19 = vmax.f32 %v367_v17, -100.0  ;;  %v371_v20 = vmul.f32 0.6931472, %v738_v18 }
  0x49   : > { %v372_v22 = vmax.f32 %v371_v20, -100.0  ;;  %v373_v23 = vmul.f32 %v368_v19, %v365_v0 }
  0x4b   : > { %v375_v24 = vmul.f32 %v374_v21, %v372_v22 }
  0x4d   : > { %v376_v25 = vadd.f32 %v375_v24, %v373_v23 }
  0x4f   : > { %v377_v26 = vsub.f32 0.0, %v376_v25 }
  0x51   : > { %v409_v27 = vcombine.high %v377_v26, %v377_v26  ;;  %v411_v28 = vsel %vm382_vm0, %v377_v26, 0.0 }
  0x53   : > { %v412_v29 = vsel %vm382_vm0, %v409_v27, 0.0 }
  0x54   : > { %v413_v30 = vadd.f32 %v412_v29, %v411_v28 }
  0x56   : > { %414 = vadd.xlane.f32.xlu1 %v413_v30 }
  0xc4   : > { %v406_v31 = vpop.xlane.xlu1 %405 }
  0xc5   : > { %407 = vst.msk [vmem:[%s356_s28] sm:$0xf] %vm388_vm1, %v406_v31 }
  0xc6   : > { %v387_v32 = vpop.xlane.xlu0 %386 }
  0xc7   : > { %389 = vst.msk [vmem:[%s342_s12] sm:$0xf] %vm388_vm1, %v387_v32 }
  0xca   : > { %v397_v33 = vpop.xlane.xlu0 %396 }
  0xcb   : > { %398 = vst.msk [vmem:[%s349_s11] sm:$0xf] %vm388_vm1, %v397_v33 }
  0xdf   : > { %v415_v34 = vpop.xlane.xlu1 %414 }
  0xe0   : > { %416 = vst.msk [vmem:[%s363_s15] sm:$0xf] %vm388_vm1, %v415_v34 }
  0xe1 PF: > { %s22_s23 = sadd.s32 1, %s849_s23   ;;  %s1036_s18 = smov %s833_s19 }
  0xe2   : > { %p19_p9 = scmp.ge.s32.totalorder %s22_s23, 4   ;;  %s1037_s19 = smov %s837_s20 }
  0xe3   : > { %s1038_s20 = smov %s932_s30  ;;  %s1039_s21 = smov %s845_s22 }
  0xe4   : > { %s1040_s22 = smov %s1042_s25  ;;  %21 = sbr.rel (!%p19_p9) target bundleno = 6 (0x6), region = 117 }
  0xe9   :  { %502 = vsyncpa [#allocation3], 1 }
  0xea   :  { %504 = vsyncpa [#allocation3 + $0x1], 1 }
  0xeb   :  { %505 = vsyncpa [#allocation5], 1 }
  0xec   :  { %507 = vsyncpa [#allocation5 + $0x1], 1 }

</bundles_post_ra>
